<compile_context>
chip_gen: v7x
topology: tpu7x:2x2x1
jax: 0.10.0
libtpu: 0.0.40
codegen_flags: <defaults>
</compile_context>

<pallas_src>
import math
import jax
import jax.numpy as jnp
from jax import lax
from jax.experimental import pallas as pl
from jax.experimental.pallas import tpu as pltpu


def _round_up(x, m):
    return ((x + m - 1) // m) * m


def _default_vmem_limit_bytes():
    """Per-generation scoped-VMEM cap (conservative when the chip is unknown)."""
    try:
        kind = jax.devices()[0].device_kind.lower()
    except Exception:
        kind = ""
    if "v2" in kind or "v3" in kind:
        return 12 * 1024 * 1024
    if "v4" in kind or "v5" in kind or "v6" in kind:
        return 96 * 1024 * 1024      # 128 MiB physical VMEM
    return 48 * 1024 * 1024          # v7x: 64 MiB physical per TensorCore


# ----------------------------------------------------------------------------
# Kernel 1: tiled  y = x @ wT + b   (x: (M, K) f32 streamed over M, wT: (K, E) resident)
# ----------------------------------------------------------------------------

def _matmul_bias_kernel(x_ref, w_ref, b_ref, o_ref):
    x = x_ref[...]
    w = w_ref[...]
    if x.dtype != w.dtype:          # cast in-register; no separate XLA/HBM cast pass
        x = x.astype(w.dtype)
    y = jnp.dot(x, w, preferred_element_type=jnp.float32)
    o_ref[...] = (y + b_ref[...]).astype(o_ref.dtype)


def _pick_tile_m(M, tile_m):
    tm = min(M, tile_m)
    steps = pl.cdiv(M, tm)
    # v7x megacore: prefer an even number of grid steps so both TensorCores get work.
    if steps > 1 and steps % 2 == 1:
        tm = max(8, _round_up(pl.cdiv(M, steps + 1), 8))
    return tm


def pallas_matmul_bias(x, wT, b_row, *, tile_m, vmem_limit):
    """x: (M, K) f32, wT: (K, E) pre-transposed (compute dtype), b_row: (1, E) f32."""
    M, K = x.shape
    Kw, E = wT.shape
    assert K == Kw
    tm = _pick_tile_m(M, tile_m)
    grid = (pl.cdiv(M, tm),)
    return pl.pallas_call(
        _matmul_bias_kernel,
        out_shape=jax.ShapeDtypeStruct((M, E), x.dtype),
        grid=grid,
        in_specs=[
            pl.BlockSpec((tm, K), lambda i: (i, 0)),                       # streamed
            pl.BlockSpec((K, E), lambda i: (0, 0),
                         pipeline_mode=pl.Buffered(1)),                    # resident weight
            pl.BlockSpec((1, E), lambda i: (0, 0),
                         pipeline_mode=pl.Buffered(1)),                    # resident bias
        ],
        out_specs=pl.BlockSpec((tm, E), lambda i: (i, 0)),
        compiler_params=pltpu.CompilerParams(
            dimension_semantics=("parallel",),
            vmem_limit_bytes=vmem_limit,
        ),
    )(x, wT, b_row)


# ----------------------------------------------------------------------------
# Kernel 2: fused word branch — single HBM read of textual_feature
#   word_out : (B, 100, E) = zero-padded proj_layer(textual_feature)
#   pooled   : (B, 1, K)   = max over valid sequence rows (textual Linear applied outside)
# ----------------------------------------------------------------------------

def pallas_word_branch(x_padded, proj_wT, proj_b_row, valid_len, word_seq_len, *,
                       vmem_limit):
    """x_padded: (B, Lp, K) f32 with Lp % 8 == 0.  valid_len: (1,) int32; rows >=
    valid_len are padding (zeroed in word_out, -inf'ed for the max)."""
    B, Lp, K = x_padded.shape
    E = proj_wT.shape[1]
    assert Lp % 8 == 0
    store_len = min(Lp, word_seq_len)
    # batches per grid step: feed the MXU >= 128 rows per matmul where possible
    bt = max(1, min(B, max(1, 128 // Lp)))
    grid = (pl.cdiv(B, bt),)

    def kernel(vl_ref, x_ref, pw_ref, pb_ref, word_ref, pooled_ref):
        xb = x_ref[...]                                                # (bt, Lp, K) f32
        row = lax.broadcasted_iota(jnp.int32, (bt, Lp, 1), 1)
        valid = row < vl_ref[0]
        # (a) max over valid rows -> pooled (exact, done in f32)
        pooled = jnp.max(jnp.where(valid, xb, -jnp.inf), axis=1, keepdims=True)
        pooled_ref[...] = pooled.astype(pooled_ref.dtype)
        # (b) proj_layer over all word rows of bt batches as ONE (bt*Lp, K) matmul
        xw = xb.reshape(bt * Lp, K)
        if xw.dtype != pw_ref.dtype:
            xw = xw.astype(pw_ref.dtype)
        y = jnp.dot(xw, pw_ref[...], preferred_element_type=jnp.float32) + pb_ref[...]
        y = jnp.where(valid, y.reshape(bt, Lp, E), 0.0).astype(word_ref.dtype)
        if store_len == Lp:
            word_ref[:, :store_len, :] = y
        else:                                                          # static branch
            word_ref[:, :store_len, :] = y[:, :store_len, :]
        if store_len < word_seq_len:                                   # static branch
            word_ref[:, store_len:, :] = jnp.zeros(
                (bt, word_seq_len - store_len, E), word_ref.dtype)

    grid_spec = pltpu.PrefetchScalarGridSpec(
        num_scalar_prefetch=1,
        grid=grid,
        in_specs=[
            pl.BlockSpec((bt, Lp, K), lambda b, vl: (b, 0, 0)),        # streamed
            pl.BlockSpec((K, E), lambda b, vl: (0, 0),
                         pipeline_mode=pl.Buffered(1)),                # resident weight
            pl.BlockSpec((1, E), lambda b, vl: (0, 0),
                         pipeline_mode=pl.Buffered(1)),                # resident bias
        ],
        out_specs=(
            pl.BlockSpec((bt, word_seq_len, E), lambda b, vl: (b, 0, 0)),
            pl.BlockSpec((bt, 1, K), lambda b, vl: (b, 0, 0)),
        ),
    )
    return pl.pallas_call(
        kernel,
        out_shape=(
            jax.ShapeDtypeStruct((B, word_seq_len, E), x_padded.dtype),
            jax.ShapeDtypeStruct((B, 1, K), jnp.float32),
        ),
        grid_spec=grid_spec,
        compiler_params=pltpu.CompilerParams(
            dimension_semantics=("parallel",),
            vmem_limit_bytes=vmem_limit,
        ),
    )(valid_len, x_padded, proj_wT, proj_b_row)


# ----------------------------------------------------------------------------
# MMTHead (eval-mode forward)
# ----------------------------------------------------------------------------

class MMTHeadPallas:
    WORD_SEQ_LENGTH = 100
    PATCH_SEQ_LENGTH = 24 * 8  # 192

    def __init__(self, key, visual_size, textual_size, embed_dim,
                 inference_mode="common", compute_dtype=jnp.float32):
        # NOTE: on v5e, pass compute_dtype=jnp.bfloat16 (f32 matmuls flip the big
        # proj_layer compute-bound on that generation's MXU).
        assert textual_size == 1024, "proj_layer is hard-coded Linear(1024, E)"
        self.embed_dim = embed_dim
        self.inference_mode = inference_mode
        self.compute_dtype = compute_dtype
        self.vmem_limit = _default_vmem_limit_bytes()
        self.tile_m = 2048 if self.vmem_limit >= (96 << 20) else 1024

        k1, k2, k3 = jax.random.split(key, 3)

        def kaiming_fan_out(k, out_f, in_f):
            # nn.init.kaiming_normal_(w, a=0, mode='fan_out'): std = sqrt(2 / fan_out)
            std = math.sqrt(2.0 / out_f)
            w = std * jax.random.normal(k, (out_f, in_f), dtype=jnp.float32)
            b = jnp.zeros((out_f,), dtype=jnp.float32)
            return w, b

        # f32 master params in the PyTorch (out, in) layout (also used by the reference)
        self.visual_w, self.visual_b = kaiming_fan_out(k1, embed_dim, visual_size)
        self.proj_w, self.proj_b = kaiming_fan_out(k2, embed_dim, 1024)
        self.textual_w, self.textual_b = kaiming_fan_out(k3, embed_dim, textual_size)

        # Pre-transposed once at init (no per-call .T on the hot eval path).
        self.visual_wT = jnp.asarray(self.visual_w.T)
        self.textual_wT = jnp.asarray(self.textual_w.T)
        # Pallas-side proj params: (K, E) in compute dtype, no lane padding (output is
        # written E-wide, no post-kernel slice); bias stays f32 (added to f32 acc).
        self.proj_wT = jnp.asarray(self.proj_w.T).astype(compute_dtype)
        self.proj_b_row = self.proj_b.reshape(1, embed_dim)

    def get_key_padding_mask(self, text_length):
        total = self.PATCH_SEQ_LENGTH + self.WORD_SEQ_LENGTH + 1
        pos = jnp.arange(total, dtype=jnp.int32)[None, :]                  # (1, total)
        thresh = (text_length.astype(jnp.int32)
                  + self.PATCH_SEQ_LENGTH + 1)[:, None]                    # (B, 1)
        return pos >= thresh                                               # (B, total) bool

    def __call__(self, visual_embed, patch_embed, textual_feature, text_length):
        B, P, K = patch_embed.shape
        L = textual_feature.shape[1]
        assert L <= self.WORD_SEQ_LENGTH
        E = self.embed_dim

        # Tiny (B, visual_size) Linear: plain XLA (below DMA/MXU granularity).
        visual_out = visual_embed @ self.visual_wT + self.visual_b         # (B, E)

        # patch_embed = proj_layer(patch_embed): tiled Pallas matmul, resident weight,
        # f32 activations read once and cast in-register, E-wide output (no slice).
        patch_flat = patch_embed.reshape(B * P, K)
        patch_out = pallas_matmul_bias(
            patch_flat, self.proj_wT, self.proj_b_row,
            tile_m=self.tile_m, vmem_limit=self.vmem_limit,
        ).reshape(B, P, E)

        # Word branch: bucket the sequence to a multiple of 8 (one compile per bucket;
        # the exact valid length is a runtime scalar), then one fused kernel reads
        # textual_feature a single time and produces the zero-padded word embedding
        # plus the max-pooled rows.
        Lp = _round_up(L, 8)
        x_pad = textual_feature if Lp == L else jnp.pad(
            textual_feature, ((0, 0), (0, Lp - L), (0, 0)))
        valid_len = jnp.array([L], dtype=jnp.int32)
        word_out, pooled = pallas_word_branch(
            x_pad, self.proj_wT, self.proj_b_row, valid_len,
            self.WORD_SEQ_LENGTH, vmem_limit=self.vmem_limit)               # (B,100,E), (B,1,K)
        # textual_embed_layer on the pooled rows: one tiny (B,K)@(K,E) XLA matmul.
        textual_out = pooled.reshape(B, -1) @ self.textual_wT + self.textual_b

        key_padding_mask = self.get_key_padding_mask(text_length)          # (B, 293)

        if self.inference_mode == "common":
            outputs = [visual_out, textual_out]
        elif self.inference_mode == "cross":
            outputs = [patch_out, word_out, key_padding_mask]
        else:
            raise NotImplementedError(self.inference_mode)
        return outputs, None


# ----------------------------------------------------------------------------
# Reference (plain JAX, f32 master weights) + demo
# ----------------------------------------------------------------------------

def _ref_forward(head, visual_embed, patch_embed, textual_feature):
    textual_embed = jnp.max(textual_feature, axis=1) @ head.textual_w.T + head.textual_b
    visual_out = visual_embed @ head.visual_w.T + head.visual_b
    patch_out = patch_embed @ head.proj_w.T + head.proj_b
    word_out = textual_feature @ head.proj_w.T + head.proj_b
    return visual_out, textual_embed, patch_out, word_out


if __name__ == "__main__":
    key = jax.random.PRNGKey(0)
    k_param, k_v, k_p, k_t = jax.random.split(key, 4)

    B = 2
    visual_size = 64
    textual_size = 1024
    embed_dim = 32
    P = 16                       # image patches in this small example
    L = 7                        # not a multiple of 8 -> exercises bucketing + masking

    visual_embed = jax.random.normal(k_v, (B, visual_size), dtype=jnp.float32)
    patch_embed = jax.random.normal(k_p, (B, P, 1024), dtype=jnp.float32)
    textual_feature = jax.random.normal(k_t, (B, L, 1024), dtype=jnp.float32)
    text_length = jnp.array([5, 7], dtype=jnp.int32)

    head_common = MMTHeadPallas(k_param, visual_size, textual_size, embed_dim,
                                inference_mode="common")
    head_cross = MMTHeadPallas(k_param, visual_size, textual_size, embed_dim,
                               inference_mode="cross")

    (v_out, t_out), _ = head_common(visual_embed, patch_embed,
                                    textual_feature, text_length)
    (p_out, w_out, kpm), _ = head_cross(visual_embed, patch_embed,
                                        textual_feature, text_length)
    jax.block_until_ready((v_out, t_out, p_out, w_out, kpm))

    # Numerical checks against the plain-JAX reference (f32 compute path).
    rv, rt, rp, rw = _ref_forward(head_common, visual_embed, patch_embed,
                                  textual_feature)
    assert jnp.allclose(v_out, rv, atol=1e-3, rtol=1e-3)
    assert jnp.allclose(t_out, rt, atol=1e-3, rtol=1e-3)
    assert jnp.allclose(p_out, rp, atol=1e-3, rtol=1e-3)
    assert w_out.shape == (B, 100, embed_dim)
    assert jnp.allclose(w_out[:, :L], rw, atol=1e-3, rtol=1e-3)
    assert jnp.all(w_out[:, L:] == 0.0)
    assert kpm.shape == (B, 24 * 8 + 100 + 1)
    assert not bool(kpm[0, int(text_length[0]) + 192])       # last valid position
    assert bool(kpm[0, int(text_length[0]) + 192 + 1])       # first padded position

    # bf16 compute path (recommended on v5e): f32 activations cast in-register,
    # f32 accumulation; loose tolerance against the f32 reference.
    head_bf16 = MMTHeadPallas(k_param, visual_size, textual_size, embed_dim,
                              inference_mode="cross", compute_dtype=jnp.bfloat16)
    (p_bf, w_bf, _), _ = head_bf16(visual_embed, patch_embed,
                                   textual_feature, text_length)
    jax.block_until_ready((p_bf, w_bf))
    assert jnp.allclose(p_bf, rp, atol=1.0, rtol=0.1)
    assert jnp.allclose(w_bf[:, :L], rw, atol=1.0, rtol=0.1)
    assert jnp.all(w_bf[:, L:] == 0.0)

    print("KERNEL_OK")
</pallas_src>

<mosaic_0001>
module attributes {stable_mosaic.version = 11 : i64} {
  func.func @_matmul_bias_kernel(%arg0: i32, %arg1: memref<32x1024xf32, #tpu.memory_space<vmem>>, %arg2: memref<1024x32xf32, #tpu.memory_space<vmem>>, %arg3: memref<1x32xf32, #tpu.memory_space<vmem>>, %arg4: memref<32x32xf32, #tpu.memory_space<vmem>>) attributes {dimension_semantics = [#tpu.dimension_semantics<parallel>], iteration_bounds = array<i64: 1>, scalar_prefetch = 0 : i64, scratch_operands = 0 : i64, tpu.core_type = #tpu.core_type<tc>, window_params = [{transform_indices = @transform_0, window_bounds = array<i64: 32, 1024>}, {pipeline_mode = #tpu.pipeline_mode<synchronous>, transform_indices = @transform_1, window_bounds = array<i64: 1024, 32>}, {pipeline_mode = #tpu.pipeline_mode<synchronous>, transform_indices = @transform_2, window_bounds = array<i64: 1, 32>}, {transform_indices = @transform_3, window_bounds = array<i64: 32, 32>}]} {
    %c0 = arith.constant 0 : index
    %c0_0 = arith.constant 0 : index
    %0 = vector.load %arg1[%c0, %c0_0] : memref<32x1024xf32, #tpu.memory_space<vmem>>, vector<32x1024xf32>
    %c0_1 = arith.constant 0 : index
    %c0_2 = arith.constant 0 : index
    %1 = vector.load %arg2[%c0_1, %c0_2] : memref<1024x32xf32, #tpu.memory_space<vmem>>, vector<1024x32xf32>
    %cst = arith.constant dense<0.000000e+00> : vector<32x32xf32>
    %2 = tpu.matmul %0, %1, %cst {dimension_numbers = #tpu.dot_dimension_numbers<[1], [0], [0], [1], [0, 0, 1, 1], [], []>} : vector<32x1024xf32>, vector<1024x32xf32>, vector<32x32xf32> -> vector<32x32xf32>
    %c0_3 = arith.constant 0 : index
    %c0_4 = arith.constant 0 : index
    %3 = vector.load %arg3[%c0_3, %c0_4] : memref<1x32xf32, #tpu.memory_space<vmem>>, vector<1x32xf32>
    %4 = vector.broadcast %3 : vector<1x32xf32> to vector<32x32xf32>
    %5 = arith.addf %2, %4 : vector<32x32xf32>
    %c0_5 = arith.constant 0 : index
    %c0_6 = arith.constant 0 : index
    %6 = vector.load %arg4[%c0_5, %c0_6] : memref<32x32xf32, #tpu.memory_space<vmem>>, vector<32x32xf32>
    tpu.vector_store %arg4[%c0_5, %c0_6], %5 {strides = array<i32>} : memref<32x32xf32, #tpu.memory_space<vmem>>, vector<32x32xf32>,
    return
  }
  func.func @transform_0(%arg0: i32) -> (i32, i32) {
    %c0_i32 = arith.constant 0 : i32
    %c0_i32_0 = arith.constant 0 : i32
    return %arg0, %c0_i32 : i32, i32
  }
  func.func @transform_1(%arg0: i32) -> (i32, i32) {
    %c0_i32 = arith.constant 0 : i32
    %c0_i32_0 = arith.constant 0 : i32
    %c0_i32_1 = arith.constant 0 : i32
    return %c0_i32, %c0_i32_0 : i32, i32
  }
  func.func @transform_2(%arg0: i32) -> (i32, i32) {
    %c0_i32 = arith.constant 0 : i32
    %c0_i32_0 = arith.constant 0 : i32
    %c0_i32_1 = arith.constant 0 : i32
    return %c0_i32, %c0_i32_0 : i32, i32
  }
  func.func @transform_3(%arg0: i32) -> (i32, i32) {
    %c0_i32 = arith.constant 0 : i32
    %c0_i32_0 = arith.constant 0 : i32
    return %arg0, %c0_i32 : i32, i32
  }
}

</mosaic_0001>

<bundles_post_ra>
// kernel: tpu_custom_call.1
= control target key start
LH: loop header
LB: loop body
LE: loop exit
PB: predicated region body
PF: predicated region fallthrough
CT: control target
= control target key end

     0   :  { %s1397_s0 = inlined_call_operand.vmem [shape: f32[32,1024], index: 0, kind: input, shape index: {}]   ;;  %s1398_s1 = inlined_call_operand.vmem [shape: f32[1024,32], index: 1, kind: input, shape index: {}]   ;;  %s1399_s2 = inlined_call_operand.vmem [shape: f32[1,32], index: 2, kind: input, shape index: {}]   ;;  %s1400_s3 = inlined_call_operand.hbm [shape: f32[32,32], index: 3, kind: output, shape index: {}]  }
   0x1   :  { %v63_v0 = vld [vmem:[%s1398_s1 + $0x80] sm:$0xff]  ;;  %v64_v1 = vld [vmem:[%s1398_s1 + $0x88] sm:$0xff]  ;;  %v65_v11 = vld [vmem:[%s1398_s1 + $0x90] sm:$0xff] }
   0x2   :  { %v47_v2 = vld [vmem:[%s1398_s1] sm:$0xff]  ;;  %v720_v3 = vpack.c.bf16 %v64_v1, %v63_v0  ;;  %v48_v4 = vld [vmem:[%s1398_s1 + $0x8] sm:$0xff]  ;;  %v66_v13 = vld [vmem:[%s1398_s1 + $0x98] sm:$0xff] }
   0x3   :  { %v95_v5 = vld [vmem:[%s1398_s1 + $0x180] sm:$0xff]  ;;  %v96_v6 = vld [vmem:[%s1398_s1 + $0x188] sm:$0xff]  ;;  %v722_v7 = vpack.c.bf16 %v48_v4, %v47_v2  ;;  %v49_v14 = vld [vmem:[%s1398_s1 + $0x10] sm:$0xff]  ;;  %v724_v16 = vpack.c.bf16 %v66_v13, %v65_v11 }
   0x4   :  { %v752_v8 = vpack.c.bf16 %v96_v6, %v95_v5  ;;  %v79_v9 = vld [vmem:[%s1398_s1 + $0x100] sm:$0xff]  ;;  %v80_v10 = vld [vmem:[%s1398_s1 + $0x108] sm:$0xff]  ;;  %721 = vmatprep.subr.bf16.mxu0 %v720_v3  ;;  %v50_v15 = vld [vmem:[%s1398_s1 + $0x18] sm:$0xff] }
   0x5   :  { %v754_v12 = vpack.c.bf16 %v80_v10, %v79_v9  ;;  %723 = vmatpush3.bf16.msra.mxu0 %v722_v7  ;;  %v726_v17 = vpack.c.bf16 %v50_v15, %v49_v14  ;;  %v97_v18 = vld [vmem:[%s1398_s1 + $0x190] sm:$0xff]  ;;  %v98_v19 = vld [vmem:[%s1398_s1 + $0x198] sm:$0xff]  ;;  %v67_v23 = vld [vmem:[%s1398_s1 + $0xa0] sm:$0xff] }
   0x6   :  { %753 = vmatprep.subr.bf16.mxu1 %v752_v8  ;;  %v81_v20 = vld [vmem:[%s1398_s1 + $0x110] sm:$0xff]  ;;  %v756_v21 = vpack.c.bf16 %v98_v19, %v97_v18  ;;  %v82_v22 = vld [vmem:[%s1398_s1 + $0x118] sm:$0xff]  ;;  %v68_v24 = vld [vmem:[%s1398_s1 + $0xa8] sm:$0xff]  ;;  %725 = vmatprep.subr.bf16.mxu0 %v724_v16 }
   0x7   :  { %755 = vmatpush3.bf16.msra.mxu1 %v754_v12  ;;  %v758_v25 = vpack.c.bf16 %v82_v22, %v81_v20  ;;  %v728_v26 = vpack.c.bf16 %v68_v24, %v67_v23  ;;  %v51_v27 = vld [vmem:[%s1398_s1 + $0x20] sm:$0xff]  ;;  %v52_v28 = vld [vmem:[%s1398_s1 + $0x28] sm:$0xff]  ;;  %v69_v35 = vld [vmem:[%s1398_s1 + $0xb0] sm:$0xff] }
   0x8   :  { %v99_v29 = vld [vmem:[%s1398_s1 + $0x1a0] sm:$0xff]  ;;  %757 = vmatprep.subr.bf16.mxu1 %v756_v21  ;;  %v100_v30 = vld [vmem:[%s1398_s1 + $0x1a8] sm:$0xff]  ;;  %v730_v33 = vpack.c.bf16 %v52_v28, %v51_v27  ;;  %v70_v36 = vld [vmem:[%s1398_s1 + $0xb8] sm:$0xff] }
   0x9   :  { %v83_v31 = vld [vmem:[%s1398_s1 + $0x120] sm:$0xff]  ;;  %v84_v32 = vld [vmem:[%s1398_s1 + $0x128] sm:$0xff]  ;;  %727 = vmatpush3.bf16.msra.mxu0 %v726_v17  ;;  %v760_v34 = vpack.c.bf16 %v100_v30, %v99_v29  ;;  %v53_v37 = vld [vmem:[%s1398_s1 + $0x30] sm:$0xff]  ;;  %v732_v39 = vpack.c.bf16 %v70_v36, %v69_v35 }
   0xa   :  { %729 = vmatprep.subr.bf16.mxu0 %v728_v26  ;;  %v762_v38 = vpack.c.bf16 %v84_v32, %v83_v31  ;;  %v54_v40 = vld [vmem:[%s1398_s1 + $0x38] sm:$0xff]  ;;  %v101_v41 = vld [vmem:[%s1398_s1 + $0x1b0] sm:$0xff]  ;;  %v71_v46 = vld [vmem:[%s1398_s1 + $0xc0] sm:$0xff] }
   0xb   :  { %759 = vmatpush3.bf16.msra.mxu1 %v758_v25  ;;  %v102_v42 = vld [vmem:[%s1398_s1 + $0x1b8] sm:$0xff]  ;;  %v85_v44 = vld [vmem:[%s1398_s1 + $0x130] sm:$0xff]  ;;  %v72_v47 = vld [vmem:[%s1398_s1 + $0xc8] sm:$0xff]  ;;  %v734_v48 = vpack.c.bf16 %v54_v40, %v53_v37 }
   0xc   :  { %761 = vmatprep.subr.bf16.mxu1 %v760_v34  ;;  %v764_v43 = vpack.c.bf16 %v102_v42, %v101_v41  ;;  %v86_v45 = vld [vmem:[%s1398_s1 + $0x138] sm:$0xff]  ;;  %v103_v49 = vld [vmem:[%s1398_s1 + $0x1c0] sm:$0xff]  ;;  %v104_v50 = vld [vmem:[%s1398_s1 + $0x1c8] sm:$0xff]  ;;  %v736_v52 = vpack.c.bf16 %v72_v47, %v71_v46 }
   0xd   :  { %731 = vmatpush3.bf16.msra.mxu0 %v730_v33  ;;  %v766_v51 = vpack.c.bf16 %v86_v45, %v85_v44  ;;  %v55_v53 = vld [vmem:[%s1398_s1 + $0x40] sm:$0xff]  ;;  %v56_v54 = vld [vmem:[%s1398_s1 + $0x48] sm:$0xff]  ;;  %v768_v56 = vpack.c.bf16 %v104_v50, %v103_v49  ;;  %v73_v58 = vld [vmem:[%s1398_s1 + $0xd0] sm:$0xff] }
   0xe   :  { %733 = vmatprep.subr.bf16.mxu0 %v732_v39  ;;  %v87_v55 = vld [vmem:[%s1398_s1 + $0x140] sm:$0xff]  ;;  %v88_v57 = vld [vmem:[%s1398_s1 + $0x148] sm:$0xff]  ;;  %v74_v59 = vld [vmem:[%s1398_s1 + $0xd8] sm:$0xff]  ;;  %v738_v62 = vpack.c.bf16 %v56_v54, %v55_v53 }
   0xf   :  { %763 = vmatpush3.bf16.msra.mxu1 %v762_v38  ;;  %v105_v60 = vld [vmem:[%s1398_s1 + $0x1d0] sm:$0xff]  ;;  %v106_v61 = vld [vmem:[%s1398_s1 + $0x1d8] sm:$0xff]  ;;  %v770_v63 = vpack.c.bf16 %v88_v57, %v87_v55  ;;  %v740_v0 = vpack.c.bf16 %v74_v59, %v73_v58  ;;  %v75_v6 = vld [vmem:[%s1398_s1 + $0xe0] sm:$0xff] }
  0x10   :  { %765 = vmatprep.subr.bf16.mxu1 %v764_v43  ;;  %v57_v1 = vld [vmem:[%s1398_s1 + $0x50] sm:$0xff]  ;;  %v58_v2 = vld [vmem:[%s1398_s1 + $0x58] sm:$0xff]  ;;  %v772_v4 = vpack.c.bf16 %v106_v61, %v105_v60  ;;  %v76_v7 = vld [vmem:[%s1398_s1 + $0xe8] sm:$0xff] }
  0x11   :  { %735 = vmatpush3.bf16.msra.mxu0 %v734_v48  ;;  %v89_v3 = vld [vmem:[%s1398_s1 + $0x150] sm:$0xff]  ;;  %v90_v5 = vld [vmem:[%s1398_s1 + $0x158] sm:$0xff]  ;;  %v107_v8 = vld [vmem:[%s1398_s1 + $0x1e0] sm:$0xff]  ;;  %v742_v10 = vpack.c.bf16 %v58_v2, %v57_v1  ;;  %v744_v14 = vpack.c.bf16 %v76_v7, %v75_v6 }
  0x12   :  { %737 = vmatprep.subr.bf16.mxu0 %v736_v52  ;;  %v108_v9 = vld [vmem:[%s1398_s1 + $0x1e8] sm:$0xff]  ;;  %v59_v11 = vld [vmem:[%s1398_s1 + $0x60] sm:$0xff]  ;;  %v774_v13 = vpack.c.bf16 %v90_v5, %v89_v3  ;;  %v77_v19 = vld [vmem:[%s1398_s1 + $0xf0] sm:$0xff] }
  0x13   :  { %767 = vmatpush3.bf16.msra.mxu1 %v766_v51  ;;  %v60_v12 = vld [vmem:[%s1398_s1 + $0x68] sm:$0xff]  ;;  %v91_v15 = vld [vmem:[%s1398_s1 + $0x160] sm:$0xff]  ;;  %v776_v18 = vpack.c.bf16 %v108_v9, %v107_v8  ;;  %v78_v20 = vld [vmem:[%s1398_s1 + $0xf8] sm:$0xff] }
  0x14   :  { %769 = vmatprep.subr.bf16.mxu1 %v768_v56  ;;  %v92_v16 = vld [vmem:[%s1398_s1 + $0x168] sm:$0xff]  ;;  %v18_v21 = vld [vmem:[%s1397_s0 + $0x18] sm:$0xff]  ;;  %v109_v22 = vld [vmem:[%s1398_s1 + $0x1f0] sm:$0xff]  ;;  %v746_v24 = vpack.c.bf16 %v60_v12, %v59_v11  ;;  %v748_v26 = vpack.c.bf16 %v78_v20, %v77_v19 }
  0x15   :  { %739 = vmatpush3.bf16.msra.mxu0 %v738_v62  ;;  %v16_v17 = vld [vmem:[%s1397_s0 + $0x8] sm:$0xff]  ;;  %v110_v23 = vld [vmem:[%s1398_s1 + $0x1f8] sm:$0xff]  ;;  %331 = vmatprep.mubr.f32.mxu1 %v18_v21  ;;  %v778_v25 = vpack.c.bf16 %v92_v16, %v91_v15  ;;  %v61_v27 = vld [vmem:[%s1398_s1 + $0x70] sm:$0xff] }
  0x16   :  { %741 = vmatprep.subr.bf16.mxu0 %v740_v0  ;;  %246 = vmatprep.mubr.f32.mxu0 %v16_v17  ;;  %v62_v28 = vld [vmem:[%s1398_s1 + $0x78] sm:$0xff]  ;;  %v93_v29 = vld [vmem:[%s1398_s1 + $0x170] sm:$0xff]  ;;  %v780_v30 = vpack.c.bf16 %v110_v23, %v109_v22  ;;  %v127_v32 = vld [vmem:[%s1398_s1 + $0x280] sm:$0xff] }
  0x17   :  { %771 = vmatpush3.bf16.msra.mxu1 %v770_v63  ;;  %v94_v31 = vld [vmem:[%s1398_s1 + $0x178] sm:$0xff]  ;;  %v128_v33 = vld [vmem:[%s1398_s1 + $0x288] sm:$0xff]  ;;  %v159_v34 = vld [vmem:[%s1398_s1 + $0x380] sm:$0xff]  ;;  %v750_v36 = vpack.c.bf16 %v62_v28, %v61_v27 }
  0x18   :  { %773 = vmatprep.subr.bf16.mxu1 %v772_v4  ;;  %v160_v35 = vld [vmem:[%s1398_s1 + $0x388] sm:$0xff]  ;;  %v782_v37 = vpack.c.bf16 %v94_v31, %v93_v29  ;;  %v784_v38 = vpack.c.bf16 %v128_v33, %v127_v32  ;;  %v111_v39 = vld [vmem:[%s1398_s1 + $0x200] sm:$0xff]  ;;  %v129_v44 = vld [vmem:[%s1398_s1 + $0x290] sm:$0xff] }
  0x19   :  { %743 = vmatpush3.bf16.msra.mxu0 %v742_v10  ;;  %v112_v40 = vld [vmem:[%s1398_s1 + $0x208] sm:$0xff]  ;;  %v143_v41 = vld [vmem:[%s1398_s1 + $0x300] sm:$0xff]  ;;  %v816_v42 = vpack.c.bf16 %v160_v35, %v159_v34  ;;  %v130_v45 = vld [vmem:[%s1398_s1 + $0x298] sm:$0xff] }
  0x1a   :  { %745 = vmatprep.subr.bf16.mxu0 %v744_v14  ;;  %v144_v43 = vld [vmem:[%s1398_s1 + $0x308] sm:$0xff]  ;;  %v161_v46 = vld [vmem:[%s1398_s1 + $0x390] sm:$0xff]  ;;  %v162_v47 = vld [vmem:[%s1398_s1 + $0x398] sm:$0xff]  ;;  %v786_v49 = vpack.c.bf16 %v112_v40, %v111_v39  ;;  %v788_v52 = vpack.c.bf16 %v130_v45, %v129_v44 }
  0x1b   :  { %775 = vmatpush3.bf16.msra.mxu1 %v774_v13  ;;  %v15_v48 = vld [vmem:[%s1397_s0] sm:$0xff]  ;;  %v17_v50 = vld [vmem:[%s1397_s0 + $0x10] sm:$0xff]  ;;  %v818_v51 = vpack.c.bf16 %v144_v43, %v143_v41  ;;  %v114_v54 = vld [vmem:[%s1398_s1 + $0x218] sm:$0xff]  ;;  %v820_v56 = vpack.c.bf16 %v162_v47, %v161_v46 }
  0x1c   :  { %777 = vmatprep.subr.bf16.mxu1 %v776_v18  ;;  %v113_v53 = vld [vmem:[%s1398_s1 + $0x210] sm:$0xff]  ;;  %v146_v57 = vld [vmem:[%s1398_s1 + $0x318] sm:$0xff]  ;;  %v131_v58 = vld [vmem:[%s1398_s1 + $0x2a0] sm:$0xff] }
  0x1d   :  { %747 = vmatpush3.bf16.msra.mxu0 %v746_v24  ;;  %v145_v55 = vld [vmem:[%s1398_s1 + $0x310] sm:$0xff]  ;;  %v132_v59 = vld [vmem:[%s1398_s1 + $0x2a8] sm:$0xff]  ;;  %v163_v60 = vld [vmem:[%s1398_s1 + $0x3a0] sm:$0xff]  ;;  %v790_v63 = vpack.c.bf16 %v114_v54, %v113_v53 }
  0x1e   :  { %749 = vmatprep.subr.bf16.mxu0 %v748_v26  ;;  %v164_v61 = vld [vmem:[%s1398_s1 + $0x3a8] sm:$0xff]  ;;  %v115_v0 = vld [vmem:[%s1398_s1 + $0x220] sm:$0xff]  ;;  %v26_v2 = vld [vmem:[%s1397_s0 + $0x58] sm:$0xff]  ;;  %v822_v3 = vpack.c.bf16 %v146_v57, %v145_v55  ;;  %v792_v4 = vpack.c.bf16 %v132_v59, %v131_v58 }
  0x1f   :  { %779 = vmatpush3.bf16.msra.mxu1 %v778_v25  ;;  %v24_v62 = vld [vmem:[%s1397_s0 + $0x48] sm:$0xff]  ;;  %v23_v1 = vld [vmem:[%s1397_s0 + $0x40] sm:$0xff]  ;;  %v25_v7 = vld [vmem:[%s1397_s0 + $0x50] sm:$0xff]  ;;  %v824_v8 = vpack.c.bf16 %v164_v61, %v163_v60 }
  0x20   :  { %781 = vmatprep.subr.bf16.mxu1 %v780_v30  ;;  %v116_v5 = vld [vmem:[%s1398_s1 + $0x228] sm:$0xff]  ;;  %v147_v6 = vld [vmem:[%s1398_s1 + $0x320] sm:$0xff]  ;;  %v133_v10 = vld [vmem:[%s1398_s1 + $0x2b0] sm:$0xff] }
  0x21   :  { %751 = vmatpush3.bf16.msra.mxu0 %v750_v36  ;;  %v148_v9 = vld [vmem:[%s1398_s1 + $0x328] sm:$0xff]  ;;  %v134_v11 = vld [vmem:[%s1398_s1 + $0x2b8] sm:$0xff]  ;;  %v165_v12 = vld [vmem:[%s1398_s1 + $0x3b0] sm:$0xff]  ;;  %v794_v15 = vpack.c.bf16 %v116_v5, %v115_v0 }
  0x22   :  { %785 = vmatprep.subr.bf16.mxu0 %v784_v38  ;;  %v166_v13 = vld [vmem:[%s1398_s1 + $0x3b8] sm:$0xff]  ;;  %v32_v14 = vld [vmem:[%s1397_s0 + $0x88] sm:$0xff]  ;;  %v117_v16 = vld [vmem:[%s1398_s1 + $0x230] sm:$0xff]  ;;  %v826_v19 = vpack.c.bf16 %v148_v9, %v147_v6  ;;  %v796_v20 = vpack.c.bf16 %v134_v11, %v133_v10 }
  0x23   :  { %783 = vmatpush3.bf16.msra.mxu1 %v782_v37  ;;  %v31_v17 = vld [vmem:[%s1397_s0 + $0x80] sm:$0xff]  ;;  %v34_v18 = vld [vmem:[%s1397_s0 + $0x98] sm:$0xff]  ;;  %v149_v22 = vld [vmem:[%s1398_s1 + $0x330] sm:$0xff]  ;;  %v828_v24 = vpack.c.bf16 %v166_v13, %v165_v12 }
  0x24   :  { %817 = vmatprep.subr.bf16.mxu1 %v816_v42  ;;  %247 = vmatmul.mubr.f32.vlgmr.msra.gmra.mrb[0].mxu0 %v15_v48  ;;  %v118_v21 = vld [vmem:[%s1398_s1 + $0x238] sm:$0xff]  ;;  %v33_v23 = vld [vmem:[%s1397_s0 + $0x90] sm:$0xff]  ;;  %v135_v26 = vld [vmem:[%s1398_s1 + $0x2c0] sm:$0xff] }
  0x25   :  { %787 = vmatpush3.bf16.msra.mxu0 %v786_v49  ;;  %251 = vmatprep.mubr.f32.mxu0 %v24_v62  ;;  %v150_v25 = vld [vmem:[%s1398_s1 + $0x338] sm:$0xff]  ;;  %v136_v27 = vld [vmem:[%s1398_s1 + $0x2c8] sm:$0xff]  ;;  %v167_v28 = vld [vmem:[%s1398_s1 + $0x3c0] sm:$0xff]  ;;  %v798_v31 = vpack.c.bf16 %v118_v21, %v117_v16 }
  0x26   :  { %332 = vmatmul.mubr.f32.vlgmr.msra.gmra.mrb[0].mxu1 %v17_v50  ;;  %789 = vmatprep.subr.bf16.mxu0 %v788_v52  ;;  %v168_v29 = vld [vmem:[%s1398_s1 + $0x3c8] sm:$0xff]  ;;  %v119_v32 = vld [vmem:[%s1398_s1 + $0x240] sm:$0xff]  ;;  %v42_v34 = vld [vmem:[%s1397_s0 + $0xd8] sm:$0xff]  ;;  %v830_v35 = vpack.c.bf16 %v150_v25, %v149_v22  ;;  %v800_v36 = vpack.c.bf16 %v136_v27, %v135_v26 }
  0x27   :  { %819 = vmatpush3.bf16.msra.mxu1 %v818_v51  ;;  %336 = vmatprep.mubr.f32.mxu1 %v26_v2  ;;  %v40_v30 = vld [vmem:[%s1397_s0 + $0xc8] sm:$0xff]  ;;  %v39_v33 = vld [vmem:[%s1397_s0 + $0xc0] sm:$0xff]  ;;  %v41_v39 = vld [vmem:[%s1397_s0 + $0xd0] sm:$0xff]  ;;  %v832_v40 = vpack.c.bf16 %v168_v29, %v167_v28 }
  0x28   :  { %821 = vmatprep.subr.bf16.mxu1 %v820_v56  ;;  %252 = vmatmul.mubr.f32.gmra.mrb[2].mxu0 %v23_v1  ;;  %v120_v37 = vld [vmem:[%s1398_s1 + $0x248] sm:$0xff]  ;;  %v151_v38 = vld [vmem:[%s1398_s1 + $0x340] sm:$0xff]  ;;  %v137_v42 = vld [vmem:[%s1398_s1 + $0x2d0] sm:$0xff] }
  0x29   :  { %791 = vmatpush3.bf16.msra.mxu0 %v790_v63  ;;  %256 = vmatprep.mubr.f32.mxu0 %v32_v14  ;;  %v152_v41 = vld [vmem:[%s1398_s1 + $0x348] sm:$0xff]  ;;  %v138_v43 = vld [vmem:[%s1398_s1 + $0x2d8] sm:$0xff]  ;;  %v169_v44 = vld [vmem:[%s1398_s1 + $0x3d0] sm:$0xff]  ;;  %v802_v46 = vpack.c.bf16 %v120_v37, %v119_v32 }
  0x2a   :  { %337 = vmatmul.mubr.f32.gmra.mrb[2].mxu1 %v25_v7  ;;  %793 = vmatprep.subr.bf16.mxu0 %v792_v4  ;;  %v170_v45 = vld [vmem:[%s1398_s1 + $0x3d8] sm:$0xff]  ;;  %v20_v47 = vld [vmem:[%s1397_s0 + $0x28] sm:$0xff]  ;;  %v834_v49 = vpack.c.bf16 %v152_v41, %v151_v38  ;;  %v804_v50 = vpack.c.bf16 %v138_v43, %v137_v42  ;;  %v121_v51 = vld [vmem:[%s1398_s1 + $0x250] sm:$0xff] }
  0x2b   :  { %823 = vmatpush3.bf16.msra.mxu1 %v822_v3  ;;  %341 = vmatprep.mubr.f32.mxu1 %v34_v18  ;;  %v22_v48 = vld [vmem:[%s1397_s0 + $0x38] sm:$0xff]  ;;  %v153_v53 = vld [vmem:[%s1398_s1 + $0x350] sm:$0xff]  ;;  %v836_v54 = vpack.c.bf16 %v170_v45, %v169_v44  ;;  %v139_v56 = vld [vmem:[%s1398_s1 + $0x2e0] sm:$0xff] }
  0x2c   :  { %825 = vmatprep.subr.bf16.mxu1 %v824_v8  ;;  %257 = vmatmul.mubr.f32.gmra.mrb[4].mxu0 %v31_v17  ;;  %v122_v52 = vld [vmem:[%s1398_s1 + $0x258] sm:$0xff]  ;;  %v140_v57 = vld [vmem:[%s1398_s1 + $0x2e8] sm:$0xff]  ;;  %v171_v58 = vld [vmem:[%s1398_s1 + $0x3e0] sm:$0xff] }
  0x2d   :  { %795 = vmatpush3.bf16.msra.mxu0 %v794_v15  ;;  %261 = vmatprep.mubr.f32.mxu0 %v40_v30  ;;  %v154_v55 = vld [vmem:[%s1398_s1 + $0x358] sm:$0xff]  ;;  %v172_v59 = vld [vmem:[%s1398_s1 + $0x3e8] sm:$0xff]  ;;  %v806_v60 = vpack.c.bf16 %v122_v52, %v121_v51  ;;  %v123_v61 = vld [vmem:[%s1398_s1 + $0x260] sm:$0xff]  ;;  %v808_v63 = vpack.c.bf16 %v140_v57, %v139_v56 }
  0x2e   :  { %342 = vmatmul.mubr.f32.gmra.mrb[4].mxu1 %v33_v23  ;;  %797 = vmatprep.subr.bf16.mxu0 %v796_v20  ;;  %v838_v62 = vpack.c.bf16 %v154_v55, %v153_v53  ;;  %v124_v0 = vld [vmem:[%s1398_s1 + $0x268] sm:$0xff]  ;;  %v155_v1 = vld [vmem:[%s1398_s1 + $0x360] sm:$0xff] }
  0x2f   :  { %827 = vmatpush3.bf16.msra.mxu1 %v826_v19  ;;  %346 = vmatprep.mubr.f32.mxu1 %v42_v34 }
  0x30   :  { %829 = vmatprep.subr.bf16.mxu1 %v828_v24  ;;  %262 = vmatmul.mubr.f32.gmra.mrb[6].mxu0 %v39_v33 }
  0x31   :  { %799 = vmatpush3.bf16.msra.mxu0 %v798_v31  ;;  %416 = vmatprep.mubr.f32.mxu0 %v20_v47 }
  0x32   :  { %347 = vmatmul.mubr.f32.gmra.mrb[6].mxu1 %v41_v39  ;;  %801 = vmatprep.subr.bf16.mxu0 %v800_v36 }
  0x33   :  { %831 = vmatpush3.bf16.msra.mxu1 %v830_v35  ;;  %501 = vmatprep.mubr.f32.mxu1 %v22_v48 }
  0x34   :  { %833 = vmatprep.subr.bf16.mxu1 %v832_v40 }
  0x35   :  { %803 = vmatpush3.bf16.msra.mxu0 %v802_v46 }
  0x36   :  { %805 = vmatprep.subr.bf16.mxu0 %v804_v50 }
  0x37   :  { %835 = vmatpush3.bf16.msra.mxu1 %v834_v49 }
  0x38   :  { %8 = vsyncpa [#allocation3], 0  ;;  %837 = vmatprep.subr.bf16.mxu1 %v836_v54  ;;  %v840_v2 = vpack.c.bf16 %v172_v59, %v171_v58  ;;  %v156_v3 = vld [vmem:[%s1398_s1 + $0x368] sm:$0xff]  ;;  %v141_v4 = vld [vmem:[%s1398_s1 + $0x2f0] sm:$0xff]  ;;  %v810_v8 = vpack.c.bf16 %v124_v0, %v123_v61  ;;  %vm522_vm0 = vcmask 261120  }
  0x39   :  { %v142_v5 = vld [vmem:[%s1398_s1 + $0x2f8] sm:$0xff]  ;;  %v173_v6 = vld [vmem:[%s1398_s1 + $0x3f0] sm:$0xff]  ;;  %807 = vmatpush3.bf16.msra.mxu0 %v806_v60  ;;  %v842_v9 = vpack.c.bf16 %v156_v3, %v155_v1  ;;  %v19_v18 = vld [vmem:[%s1397_s0 + $0x20] sm:$0xff] }
  0x3a   :  { %v174_v7 = vld [vmem:[%s1398_s1 + $0x3f8] sm:$0xff]  ;;  %809 = vmatprep.subr.bf16.mxu0 %v808_v63  ;;  %v812_v10 = vpack.c.bf16 %v142_v5, %v141_v4  ;;  %v125_v11 = vld [vmem:[%s1398_s1 + $0x270] sm:$0xff]  ;;  %v28_v20 = vld [vmem:[%s1397_s0 + $0x68] sm:$0xff] }
  0x3b   :  { %839 = vmatpush3.bf16.msra.mxu1 %v838_v62  ;;  %v126_v12 = vld [vmem:[%s1398_s1 + $0x278] sm:$0xff]  ;;  %v844_v13 = vpack.c.bf16 %v174_v7, %v173_v6  ;;  %v157_v14 = vld [vmem:[%s1398_s1 + $0x370] sm:$0xff]  ;;  %v27_v22 = vld [vmem:[%s1397_s0 + $0x60] sm:$0xff] }
  0x3c   :  { %841 = vmatprep.subr.bf16.mxu1 %v840_v2  ;;  %v158_v15 = vld [vmem:[%s1398_s1 + $0x378] sm:$0xff]  ;;  %v814_v16 = vpack.c.bf16 %v126_v12, %v125_v11  ;;  %v21_v19 = vld [vmem:[%s1397_s0 + $0x30] sm:$0xff]  ;;  %v36_v24 = vld [vmem:[%s1397_s0 + $0xa8] sm:$0xff] }
  0x3d   :  { %811 = vmatpush3.bf16.msra.mxu0 %v810_v8  ;;  %v846_v17 = vpack.c.bf16 %v158_v15, %v157_v14  ;;  %v30_v21 = vld [vmem:[%s1397_s0 + $0x78] sm:$0xff]  ;;  %v29_v23 = vld [vmem:[%s1397_s0 + $0x70] sm:$0xff]  ;;  %v35_v26 = vld [vmem:[%s1397_s0 + $0xa0] sm:$0xff] }
  0x3e   :  { %813 = vmatprep.subr.bf16.mxu0 %v812_v10  ;;  %v38_v25 = vld [vmem:[%s1397_s0 + $0xb8] sm:$0xff]  ;;  %v37_v27 = vld [vmem:[%s1397_s0 + $0xb0] sm:$0xff]  ;;  %v44_v28 = vld [vmem:[%s1397_s0 + $0xe8] sm:$0xff] }
  0x3f   :  { %843 = vmatpush3.bf16.msra.mxu1 %v842_v9  ;;  %v46_v29 = vld [vmem:[%s1397_s0 + $0xf8] sm:$0xff]  ;;  %v43_v30 = vld [vmem:[%s1397_s0 + $0xe0] sm:$0xff]  ;;  %v45_v31 = vld [vmem:[%s1397_s0 + $0xf0] sm:$0xff]  ;;  %s875_s0 = smov [#allocation2]  }
  0x40   :  { %845 = vmatprep.subr.bf16.mxu1 %v844_v13  ;;  %v543_v33 = vld [vmem:[%s1399_s2] ss:$0 sm:$0xff]  ;;  %s532_s2 = sshll.u32 %s875_s0, 4  ;;  %s533_s2 = int_to_ptr.vmem [resolvable:$true] %s532_s2 }
  0x41   :  { %815 = vmatpush3.bf16.msra.mxu0 %v814_v16  ;;  %s851_s9 = scalar_lea.vmem %s533_s2, 512  ;;  %p856_p1 = scmp.lt.s32.totalorder %s533_s2, %s533_s2 }
  0x42   :  { %p852_p0 = scmp.ne.s32.totalorder %s533_s2, %s851_s9  ;;  %p857_p2 = scmp.lt.s32.totalorder %s851_s9, %s851_s9 }
  0x43   :  { %847 = vmatpush3.bf16.msra.mxu1 %v846_v17 }
  0x44   :  { %417 = vmatmul.mubr.f32.vlgmr.msra.gmra.mrb[8].mxu0 %v19_v18  ;;  %p858_p3 = por %p857_p2, %p856_p1 }
  0x45   :  { %421 = vmatprep.mubr.f32.mxu0 %v28_v20 }
  0x46   :  { %502 = vmatmul.mubr.f32.vlgmr.msra.gmra.mrb[8].mxu1 %v21_v19  ;;  %p859_p4 = pnand %p858_p3, %p852_p0 }
  0x47   :  { %506 = vmatprep.mubr.f32.mxu1 %v30_v21 }
  0x48   :  { %422 = vmatmul.mubr.f32.gmra.mrb[10].mxu0 %v27_v22 }
  0x49   :  { %426 = vmatprep.mubr.f32.mxu0 %v36_v24 }
  0x4a   :  { %507 = vmatmul.mubr.f32.gmra.mrb[10].mxu1 %v29_v23 }
  0x4b   :  { %511 = vmatprep.mubr.f32.mxu1 %v38_v25 }
  0x4c   :  { %427 = vmatmul.mubr.f32.gmra.mrb[12].mxu0 %v35_v26 }
  0x4d   :  { %431 = vmatprep.mubr.f32.mxu0 %v44_v28 }
  0x4e   :  { %512 = vmatmul.mubr.f32.gmra.mrb[12].mxu1 %v37_v27 }
  0x4f   :  { %516 = vmatprep.mubr.f32.mxu1 %v46_v29 }
  0x50   :  { %432 = vmatmul.mubr.f32.gmra.mrb[14].mxu0 %v43_v30 }
  0x52   :  { %517 = vmatmul.mubr.f32.gmra.mrb[14].mxu1 %v45_v31 }
  0xf7   :  { %v576_v32 = vpop.f32.mrb[0].mxu0 }
  0xf8   :  { %v577_v34 = vpop.f32.mrb[1].mxu0 }
  0xf9   :  { %v620_v35 = vpop.f32.mrb[0].mxu1  ;;  %v578_v36 = vadd.f32 %v577_v34, %v576_v32 }
  0xfa   :  { %v621_v37 = vpop.f32.mrb[1].mxu1 }
  0xfb   :  { %v622_v38 = vadd.f32 %v621_v37, %v620_v35  ;;  %v249_v39 = vadd.f32 %v578_v36, %v543_v33  ;;  %v579_v40 = vpop.f32.mrb[2].mxu0 }
  0xfc   :  { %v580_v41 = vpop.f32.mrb[3].mxu0 }
  0xfd   :  { %v623_v42 = vpop.f32.mrb[2].mxu1  ;;  %v334_v43 = vadd.f32 %v622_v38, %v249_v39  ;;  %v581_v44 = vadd.f32 %v580_v41, %v579_v40 }
  0xfe   :  { %v624_v45 = vpop.f32.mrb[3].mxu1 }
  0xff   :  { %v625_v46 = vadd.f32 %v624_v45, %v623_v42  ;;  %v254_v47 = vadd.f32 %v581_v44, %v543_v33  ;;  %v582_v48 = vpop.f32.mrb[4].mxu0 }
 0x100   :  { %v583_v49 = vpop.f32.mrb[5].mxu0 }
 0x101   :  { %v626_v50 = vpop.f32.mrb[4].mxu1  ;;  %v339_v51 = vadd.f32 %v625_v46, %v254_v47  ;;  %v584_v52 = vadd.f32 %v583_v49, %v582_v48 }
 0x102   :  { %v627_v53 = vpop.f32.mrb[5].mxu1 }
 0x103   :  { %v628_v54 = vadd.f32 %v627_v53, %v626_v50  ;;  %v259_v55 = vadd.f32 %v584_v52, %v543_v33  ;;  %v585_v56 = vpop.f32.mrb[6].mxu0 }
 0x104   :  { %v586_v57 = vpop.f32.mrb[7].mxu0 }
 0x105   :  { %v629_v58 = vpop.f32.mrb[6].mxu1  ;;  %v344_v59 = vadd.f32 %v628_v54, %v259_v55  ;;  %v587_v60 = vadd.f32 %v586_v57, %v585_v56 }
 0x106   :  { %v630_v61 = vpop.f32.mrb[7].mxu1 }
 0x107   :  { %v631_v62 = vadd.f32 %v630_v61, %v629_v58  ;;  %v264_v63 = vadd.f32 %v587_v60, %v543_v33 }
 0x109   :  { %v349_v0 = vadd.f32 %v631_v62, %v264_v63 }
 0x117   :  { %v664_v1 = vpop.f32.mrb[8].mxu0 }
 0x118   :  { %v665_v2 = vpop.f32.mrb[9].mxu0 }
 0x119   :  { %v708_v3 = vpop.f32.mrb[8].mxu1  ;;  %v666_v4 = vadd.f32 %v665_v2, %v664_v1 }
 0x11a   :  { %v709_v5 = vpop.f32.mrb[9].mxu1 }
 0x11b   :  { %v710_v6 = vadd.f32 %v709_v5, %v708_v3  ;;  %v419_v7 = vadd.f32 %v666_v4, %v334_v43  ;;  %v667_v8 = vpop.f32.mrb[10].mxu0 }
 0x11c   :  { %v668_v9 = vpop.f32.mrb[11].mxu0 }
 0x11d   :  { %v711_v10 = vpop.f32.mrb[10].mxu1  ;;  %v504_v11 = vadd.f32 %v710_v6, %v419_v7  ;;  %v669_v12 = vadd.f32 %v668_v9, %v667_v8 }
 0x11e   :  { %v712_v13 = vpop.f32.mrb[11].mxu1 }
 0x11f   :  { %v713_v14 = vadd.f32 %v712_v13, %v711_v10  ;;  %523 = vst.msk [vmem:[#allocation2] sm:$0xff] %vm522_vm0, %v504_v11  ;;  %v424_v15 = vadd.f32 %v669_v12, %v339_v51  ;;  %v670_v16 = vpop.f32.mrb[12].mxu0 }
 0x120   :  { %v671_v17 = vpop.f32.mrb[13].mxu0 }
 0x121   :  { %v714_v18 = vpop.f32.mrb[12].mxu1  ;;  %v509_v19 = vadd.f32 %v713_v14, %v424_v15  ;;  %v672_v20 = vadd.f32 %v671_v17, %v670_v16 }
 0x122   :  { %v715_v21 = vpop.f32.mrb[13].mxu1 }
 0x123   :  { %v716_v22 = vadd.f32 %v715_v21, %v714_v18  ;;  %524 = vst.msk [vmem:[#allocation2 + $0x8] sm:$0xff] %vm522_vm0, %v509_v19  ;;  %v429_v23 = vadd.f32 %v672_v20, %v344_v59  ;;  %v673_v24 = vpop.f32.mrb[14].mxu0 }
 0x124   :  { %v674_v25 = vpop.f32.mrb[15].mxu0 }
 0x125   :  { %v717_v26 = vpop.f32.mrb[14].mxu1  ;;  %v514_v27 = vadd.f32 %v716_v22, %v429_v23  ;;  %v675_v28 = vadd.f32 %v674_v25, %v673_v24 }
 0x126   :  { %v718_v29 = vpop.f32.mrb[15].mxu1 }
 0x127   :  { %v719_v30 = vadd.f32 %v718_v29, %v717_v26  ;;  %525 = vst.msk [vmem:[#allocation2 + $0x10] sm:$0xff] %vm522_vm0, %v514_v27  ;;  %v434_v31 = vadd.f32 %v675_v28, %v349_v0 }
 0x129   :  { %v519_v32 = vadd.f32 %v719_v30, %v434_v31 }
 0x12b   :  { %526 = vst.msk [vmem:[#allocation2 + $0x18] sm:$0xff] %vm522_vm0, %v519_v32 }
 0x12c   :  { %862 = shalt.err (!%p859_p4)
}
 0x12d   :  { %s863_s12 = scalar_lea.hbm %s1400_s3, 512 }
 0x12e   :  { %p864_p5 = scmp.ne.s32.totalorder %s1400_s3, %s863_s12  ;;  %p867_p6 = scmp.lt.u32.totalorder %s863_s12, %s1400_s3 }
 0x130   :  { %p869_p7 = pnand %p867_p6, %p864_p5 }
 0x132   :  { %872 = shalt.err (!%p869_p7)
}
 0x133   :  { %s876_s16 = smov 128   ;;  %s877_s17 = smov 8  }
 0x134   :  { %538 = dma.vmem_to_hbm [thread:$0]  %s533_s2, 512, %s1400_s3, [#allocation3], %s876_s16, %s876_s16, %s877_s17  }
 0x135   :  { %873 = dma.done.wait [#allocation3], 512  }
 0x136   :  { %874 = vsyncadd [#allocation3], 4294966784 }
 0x137   :  { %542 = vsyncpa [#allocation3], 1 }

</bundles_post_ra>
